<compile_context>
chip_gen: v5e
topology: v5e:2x2
jax: 0.10.0
libtpu: 0.0.40
codegen_flags: <defaults>
</compile_context>

<pallas_src>
import jax
import jax.numpy as jnp
import numpy as np
from jax.experimental import pallas as pl
from jax.experimental.pallas import tpu as pltpu


def _round_up(x, m):
    return (x + m - 1) // m * m


def _pick_tile(hw, cap=8192):
    """Largest multiple of 128 dividing hw (<= cap), so lane padding and the
    post-kernel trim are no-ops; falls back to round_up(hw, 128) capped."""
    best = 0
    t = 128
    lim = min(cap, hw)
    while t <= lim:
        if hw % t == 0:
            best = t
        t += 128
    if best:
        return best
    return max(128, min(cap, _round_up(hw, 128)))


def prior_kernel(p_ref, w1t_ref, b1_ref, w2t_ref, b2_ref, out_ref):
    """Fused (baseline + unet) forward for one (batch, spatial-tile) block.

    p_ref  : (1, K, TL)   bf16  im2col patches, spatial on the lane axis
    w1t_ref: (Chid, K)    bf16  fused 3x3 conv weight (transposed)
    b1_ref : (Chid, 1)    f32   fused conv bias
    w2t_ref: (C, Chid)    bf16  fused 1x1 weight (transposed)
    b2_ref : (C, 1)       f32   bb2 + bu2
    out_ref: (1, C, TL)   f32   lane-dense output (== features + bk_res)
    """
    patches = p_ref[0]                                        # (K, TL) bf16
    h = jnp.dot(w1t_ref[...], patches,
                preferred_element_type=jnp.float32)           # (Chid, TL) f32
    h = jnp.maximum(h + b1_ref[...], 0.0)                     # bias + ReLU, f32
    out = jnp.dot(w2t_ref[...], h.astype(w2t_ref.dtype),
                  preferred_element_type=jnp.float32)         # (C, TL) f32
    out_ref[0] = out + b2_ref[...]


def prior_net_forward(image_nchw, label_nchw, params):
    """image_nchw: (N,3,H,W), label_nchw: (N,1,H,W) -> (N,num_classes,H,W)."""
    N, _, H, W = image_nchw.shape
    c_base = params["wb1"].shape[-1]
    c_unet = params["wu1"].shape[-1]
    chid = c_base + c_unet
    num_classes = params["wb2"].shape[-1]

    HW = H * W
    K = 9 * 4                                  # 3x3 taps x fused in-channels

    TL = _pick_tile(HW)                        # big lane tile (mult. of 128)
    n_tiles = _round_up(HW, TL) // TL
    if N * n_tiles < 2:                        # keep >=2 programs for v7x 2xTC
        tl2 = _pick_tile(HW, cap=max(128, TL // 2))
        if _round_up(HW, tl2) // tl2 >= 2:
            TL = tl2
            n_tiles = _round_up(HW, TL) // TL
    HWpad = n_tiles * TL

    # ---- glue: fuse inputs (bf16), SAME-pad, im2col (tap-major, channel) ---
    fusion = jnp.concatenate([image_nchw, label_nchw], axis=1).astype(jnp.bfloat16)
    fus_p = jnp.pad(fusion, ((0, 0), (0, 0), (1, 1), (1, 1)))        # (N,4,H+2,W+2)
    taps = [fus_p[:, :, dy:dy + H, dx:dx + W]
            for dy in range(3) for dx in range(3)]
    patches = jnp.stack(taps, axis=1).reshape(N, K, HW)              # (N,36,HW) bf16
    if HWpad != HW:
        patches = jnp.pad(patches, ((0, 0), (0, 0), (0, HWpad - HW)))

    # ---- glue: fuse the two branches into one conv + one 1x1 ---------------
    wb1_4 = jnp.pad(params["wb1"], ((0, 0), (0, 1), (0, 0)))         # (9,4,c_base)
    w1 = jnp.concatenate([wb1_4, params["wu1"]], axis=-1)            # (9,4,chid)
    w1t = w1.reshape(K, chid).T.astype(jnp.bfloat16)                 # (chid,K)
    b1 = jnp.concatenate([params["bb1"], params["bu1"]], axis=-1)    # (1,chid)
    b1 = b1.reshape(chid, 1).astype(jnp.float32)
    w2 = jnp.concatenate([params["wb2"], params["wu2"]], axis=0)     # (chid,C)
    w2t = w2.T.astype(jnp.bfloat16)                                  # (C,chid)
    b2 = (params["bb2"] + params["bu2"]).reshape(num_classes, 1).astype(jnp.float32)

    def full_spec(a):
        nd = a.ndim
        return pl.BlockSpec(a.shape, lambda b, t, _nd=nd: (0,) * _nd)

    out = pl.pallas_call(
        prior_kernel,
        out_shape=jax.ShapeDtypeStruct((N, num_classes, HWpad), jnp.float32),
        grid_spec=pltpu.PrefetchScalarGridSpec(
            num_scalar_prefetch=0,
            grid=(N, n_tiles),
            in_specs=[
                pl.BlockSpec((1, K, TL), lambda b, t: (b, 0, t)),
                full_spec(w1t), full_spec(b1), full_spec(w2t), full_spec(b2),
            ],
            out_specs=pl.BlockSpec((1, num_classes, TL), lambda b, t: (b, 0, t)),
        ),
        compiler_params=pltpu.CompilerParams(
            dimension_semantics=("parallel", "parallel"),
            vmem_limit_bytes=32 * 1024 * 1024),
    )(patches, w1t, b1, w2t, b2)

    # (N, C, HWpad) -> trim lane padding (no-op when TL | HW) -> NCHW reshape
    if HWpad != HW:
        out = out[:, :, :HW]
    return out.reshape(N, num_classes, H, W)


def init_params(key, num_classes, c_base=32, c_unet=32):
    ks = jax.random.split(key, 8)
    s = 0.1
    return {
        # baseline proxy: 3 -> c_base -> num_classes
        "wb1": s * jax.random.normal(ks[0], (9, 3, c_base), jnp.float32),
        "bb1": s * jax.random.normal(ks[1], (1, c_base), jnp.float32),
        "wb2": s * jax.random.normal(ks[2], (c_base, num_classes), jnp.float32),
        "bb2": s * jax.random.normal(ks[3], (1, num_classes), jnp.float32),
        # unet proxy: 4 -> c_unet -> num_classes
        "wu1": s * jax.random.normal(ks[4], (9, 4, c_unet), jnp.float32),
        "bu1": s * jax.random.normal(ks[5], (1, c_unet), jnp.float32),
        "wu2": s * jax.random.normal(ks[6], (c_unet, num_classes), jnp.float32),
        "bu2": s * jax.random.normal(ks[7], (1, num_classes), jnp.float32),
    }


def _reference_forward(image_nchw, label_nchw, params):
    """Pure-JAX f32 reference (lax conv, two separate branches + add)."""
    image = jnp.transpose(image_nchw, (0, 2, 3, 1)).astype(jnp.float32)
    label = jnp.transpose(label_nchw, (0, 2, 3, 1)).astype(jnp.float32)
    fusion = jnp.concatenate([image, label], axis=-1)

    def conv3x3(x, w_taps, b):
        w = w_taps.reshape(3, 3, w_taps.shape[1], w_taps.shape[2])
        y = jax.lax.conv_general_dilated(
            x, w, (1, 1), "SAME",
            dimension_numbers=("NHWC", "HWIO", "NHWC"))
        return y + b.reshape(1, 1, 1, -1)

    h = jnp.maximum(conv3x3(image, params["wb1"], params["bb1"]), 0.0)
    bk = jnp.einsum("nhwc,cd->nhwd", h, params["wb2"]) + params["bb2"].reshape(1, 1, 1, -1)
    u = jnp.maximum(conv3x3(fusion, params["wu1"], params["bu1"]), 0.0)
    ft = jnp.einsum("nhwc,cd->nhwd", u, params["wu2"]) + params["bu2"].reshape(1, 1, 1, -1)
    return jnp.transpose(ft + bk, (0, 3, 1, 2))


if __name__ == "__main__":
    N, H, W = 2, 16, 16
    num_classes = 8

    key = jax.random.PRNGKey(0)
    k_img, k_lab, k_par = jax.random.split(key, 3)
    image = jax.random.normal(k_img, (N, 3, H, W), jnp.float32)   # x[0]
    label = jax.random.normal(k_lab, (N, 1, H, W), jnp.float32)   # x[1]
    params = init_params(k_par, num_classes)

    out = prior_net_forward(image, label, params)
    out = jax.block_until_ready(out)

    ref = jax.block_until_ready(_reference_forward(image, label, params))
    # bf16 operands with f32 accumulation vs pure-f32 reference -> looser tol.
    np.testing.assert_allclose(np.asarray(out), np.asarray(ref),
                               rtol=5e-2, atol=5e-2)
    assert out.shape == (N, num_classes, H, W)
    print("KERNEL_OK")
</pallas_src>

<mosaic_0001>
module attributes {stable_mosaic.version = 11 : i64} {
  func.func @prior_kernel(%arg0: i32, %arg1: i32, %arg2: memref<1x36x256xbf16, #tpu.memory_space<vmem>>, %arg3: memref<64x36xbf16, #tpu.memory_space<vmem>>, %arg4: memref<64x1xf32, #tpu.memory_space<vmem>>, %arg5: memref<8x64xbf16, #tpu.memory_space<vmem>>, %arg6: memref<8x1xf32, #tpu.memory_space<vmem>>, %arg7: memref<1x8x256xf32, #tpu.memory_space<vmem>>) attributes {dimension_semantics = [#tpu.dimension_semantics<parallel>, #tpu.dimension_semantics<parallel>], iteration_bounds = array<i64: 2, 1>, scalar_prefetch = 0 : i64, scratch_operands = 0 : i64, tpu.core_type = #tpu.core_type<tc>, window_params = [{transform_indices = @transform_0, window_bounds = array<i64: 1, 36, 256>}, {pipeline_mode = #tpu.pipeline_mode<synchronous>, transform_indices = @transform_1, window_bounds = array<i64: 64, 36>}, {pipeline_mode = #tpu.pipeline_mode<synchronous>, transform_indices = @transform_2, window_bounds = array<i64: 64, 1>}, {pipeline_mode = #tpu.pipeline_mode<synchronous>, transform_indices = @transform_3, window_bounds = array<i64: 8, 64>}, {pipeline_mode = #tpu.pipeline_mode<synchronous>, transform_indices = @transform_4, window_bounds = array<i64: 8, 1>}, {transform_indices = @transform_5, window_bounds = array<i64: 1, 8, 256>}]} {
    %c0 = arith.constant 0 : index
    %c0_0 = arith.constant 0 : index
    %c0_1 = arith.constant 0 : index
    %0 = vector.load %arg2[%c0, %c0_0, %c0_1] : memref<1x36x256xbf16, #tpu.memory_space<vmem>>, vector<1x36x256xbf16>
    %1 = vector.shape_cast %0 : vector<1x36x256xbf16> to vector<36x256xbf16>
    %c0_2 = arith.constant 0 : index
    %c0_3 = arith.constant 0 : index
    %2 = vector.load %arg3[%c0_2, %c0_3] : memref<64x36xbf16, #tpu.memory_space<vmem>>, vector<64x36xbf16>
    %cst = arith.constant dense<0.000000e+00> : vector<64x256xf32>
    %3 = tpu.matmul %2, %1, %cst {dimension_numbers = #tpu.dot_dimension_numbers<[1], [0], [0], [1], [0, 0, 1, 1], [], []>} : vector<64x36xbf16>, vector<36x256xbf16>, vector<64x256xf32> -> vector<64x256xf32>
    %c0_4 = arith.constant 0 : index
    %c0_5 = arith.constant 0 : index
    %4 = vector.load %arg4[%c0_4, %c0_5] : memref<64x1xf32, #tpu.memory_space<vmem>>, vector<64x1xf32>
    %5 = vector.broadcast %4 : vector<64x1xf32> to vector<64x256xf32>
    %6 = arith.addf %3, %5 : vector<64x256xf32>
    %cst_6 = arith.constant 0.000000e+00 : f32
    %7 = vector.broadcast %cst_6 : f32 to vector<64x256xf32>
    %8 = arith.maximumf %6, %7 : vector<64x256xf32>
    %c0_7 = arith.constant 0 : index
    %c0_8 = arith.constant 0 : index
    %9 = vector.load %arg5[%c0_7, %c0_8] : memref<8x64xbf16, #tpu.memory_space<vmem>>, vector<8x64xbf16>
    %10 = arith.truncf %8 : vector<64x256xf32> to vector<64x256xbf16>
    %cst_9 = arith.constant dense<0.000000e+00> : vector<8x256xf32>
    %11 = tpu.matmul %9, %10, %cst_9 {dimension_numbers = #tpu.dot_dimension_numbers<[1], [0], [0], [1], [0, 0, 1, 1], [], []>} : vector<8x64xbf16>, vector<64x256xbf16>, vector<8x256xf32> -> vector<8x256xf32>
    %c0_10 = arith.constant 0 : index
    %c0_11 = arith.constant 0 : index
    %12 = vector.load %arg6[%c0_10, %c0_11] : memref<8x1xf32, #tpu.memory_space<vmem>>, vector<8x1xf32>
    %13 = vector.broadcast %12 : vector<8x1xf32> to vector<8x256xf32>
    %14 = arith.addf %11, %13 : vector<8x256xf32>
    %c0_12 = arith.constant 0 : index
    %c0_13 = arith.constant 0 : index
    %c0_14 = arith.constant 0 : index
    %15 = vector.load %arg7[%c0_12, %c0_13, %c0_14] : memref<1x8x256xf32, #tpu.memory_space<vmem>>, vector<1x8x256xf32>
    %16 = vector.shape_cast %15 : vector<1x8x256xf32> to vector<8x256xf32>
    %17 = vector.shape_cast %14 : vector<8x256xf32> to vector<1x8x256xf32>
    tpu.vector_store %arg7[%c0_12, %c0_13, %c0_14], %17 {strides = array<i32>} : memref<1x8x256xf32, #tpu.memory_space<vmem>>, vector<1x8x256xf32>,
    return
  }
  func.func @transform_0(%arg0: i32, %arg1: i32) -> (i32, i32, i32) {
    %c0_i32 = arith.constant 0 : i32
    %c0_i32_0 = arith.constant 0 : i32
    return %arg0, %c0_i32, %arg1 : i32, i32, i32
  }
  func.func @transform_1(%arg0: i32, %arg1: i32) -> (i32, i32) {
    %c0_i32 = arith.constant 0 : i32
    %c0_i32_0 = arith.constant 0 : i32
    %c0_i32_1 = arith.constant 0 : i32
    return %c0_i32, %c0_i32_0 : i32, i32
  }
  func.func @transform_2(%arg0: i32, %arg1: i32) -> (i32, i32) {
    %c0_i32 = arith.constant 0 : i32
    %c0_i32_0 = arith.constant 0 : i32
    %c0_i32_1 = arith.constant 0 : i32
    return %c0_i32, %c0_i32_0 : i32, i32
  }
  func.func @transform_3(%arg0: i32, %arg1: i32) -> (i32, i32) {
    %c0_i32 = arith.constant 0 : i32
    %c0_i32_0 = arith.constant 0 : i32
    %c0_i32_1 = arith.constant 0 : i32
    return %c0_i32, %c0_i32_0 : i32, i32
  }
  func.func @transform_4(%arg0: i32, %arg1: i32) -> (i32, i32) {
    %c0_i32 = arith.constant 0 : i32
    %c0_i32_0 = arith.constant 0 : i32
    %c0_i32_1 = arith.constant 0 : i32
    return %c0_i32, %c0_i32_0 : i32, i32
  }
  func.func @transform_5(%arg0: i32, %arg1: i32) -> (i32, i32, i32) {
    %c0_i32 = arith.constant 0 : i32
    %c0_i32_0 = arith.constant 0 : i32
    return %arg0, %c0_i32, %arg1 : i32, i32, i32
  }
}

</mosaic_0001>

<bundles_post_ra>
// kernel: tpu_custom_call.1
= control target key start
LH: loop header
LB: loop body
LE: loop exit
PB: predicated region body
PF: predicated region fallthrough
CT: control target
= control target key end

     0   :  { %10 = vsyncpa [#allocation3], 0  ;;  %s984_s0 = inlined_call_operand.vmem [shape: bf16[2,36,256], index: 0, kind: input, shape index: {}]   ;;  %s985_s1 = inlined_call_operand.vmem [shape: bf16[64,36], index: 1, kind: input, shape index: {}]   ;;  %s986_s2 = inlined_call_operand.vmem [shape: f32[64,1], index: 2, kind: input, shape index: {}]   ;;  %s987_s3 = inlined_call_operand.vmem [shape: bf16[8,64], index: 3, kind: input, shape index: {}]   ;;  %s988_s4 = inlined_call_operand.vmem [shape: f32[8,1], index: 4, kind: input, shape index: {}]   ;;  %s989_s5 = inlined_call_operand.hbm [shape: f32[2,8,256], index: 5, kind: output, shape index: {}]  }
   0x1   :  { %12 = vsyncpa [#allocation3 + $0x1], 0  ;;  %s837_s18 = smov 0   ;;  %s839_s19 = smov 0  }
   0x2   :  { %s841_s20 = smov 0   ;;  %s843_s21 = smov 0  }
   0x3   :  { %s845_s22 = smov 0   ;;  %s847_s23 = smov 0  }
   0x4 LB: > { %s597_s24 = sadd.s32 4294967295, %s804_s23   ;;  %s598_s25 = sadd.s32 4294967294, %s804_s23   ;;  %s804_s23 = sphi %s847_s23, %s18_s23   ;;  %s800_s22 = sphi %s845_s22, %s996_s22   ;;  %s796_s21 = sphi %s843_s21, %s995_s21   ;;  %s792_s20 = sphi %s841_s20, %s994_s20   ;;  %s788_s19 = sphi %s839_s19, %s993_s19   ;;  %s784_s18 = sphi %s837_s18, %s992_s18  }
   0x5   : > { %s30_s26 = sadd.s32 1, %s800_s22  ;;  %s151_s27 = sadd.s32 1, %s792_s20 }
   0x6   : > { %p32_p0 = scmp.ge.s32.totalorder %s30_s26, 2  ;;  %p161_p1 = scmp.ne.s32.totalorder %s792_s20, %s788_s19 }
   0x7   : > { %p162_p2 = scmp.eq.s32.totalorder %s597_s24, 1  ;;  %p167_p3 = scmp.ne.s32.totalorder %s788_s19, %s784_s18 }
   0x8   : > { %s998_s26 = smov (%p32_p0, %s30_s26), 0  ;;  %p168_p5 = scmp.eq.s32.totalorder %s598_s25, 1 }
   0x9   : > { %p877_p4 = por %p162_p2, %p161_p1  ;;  %s146_s29 = ssub.s32 %s800_s22, %s998_s26 }
   0xa   : > { %p601_p6 = scmp.ge.s32.totalorder %s804_s23, 1  ;;  %p149_p7 = scmp.eq.s32.totalorder %s146_s29, 0 }
   0xb   : > { %p884_p8 = por %p168_p5, %p167_p3  ;;  %p211_p9 = scmp.lt.s32.totalorder %s804_s23, 3 }
   0xc   : > { %s890_s6 = scalar_select %p149_p7, %s792_s20, %s151_s27  }
   0xd   : > { %p212_p10 = pnand %p601_p6, %p211_p9 }
   0xe   : > { %p244_p11 = scmp.lt.s32.totalorder (!%p212_p10), %s796_s21, 1  ;;  %s240_s10 = sand.u32 (!%p212_p10), 1, %s788_s19  }
   0xf   : > { %215 = sbr.rel (%p212_p10) target bundleno = 365 (0x16d), region = 40  ;;  %s503_s25 = scalar_lea.sflag (!%p212_p10), [#allocation3], %s240_s10 }
  0x10   : > { %s746_s8 = scalar_lea.hbm (!%p212_p10), %s989_s5, 32 }
  0x14   : > { %v274_v0 = vld [vmem:[%s986_s2 + $0x30] sm:$0xff]  ;;  %v806_v1 = vmov 0   ;;  %v272_v2 = vld [vmem:[%s986_s2 + $0x20] sm:$0xff]  ;;  %s245_s11 = scalar_select %p244_p11, %s796_s21, 1  ;;  %v275_v4 = vld [vmem:[%s986_s2 + $0x38] sm:$0xff]  ;;  %vm374_vm0 = vcmask 1041408  }
  0x15   : > { %723 = vset.pattern.permute.xlu0 %v806_v1  ;;  %724 = vset.pattern.permute.xlu1 %v806_v1  ;;  %v273_v7 = vld [vmem:[%s986_s2 + $0x28] sm:$0xff]  ;;  %v268_v22 = vld [vmem:[%s986_s2] sm:$0xff]  ;;  %vm361_vm1 = vcmask 293888   ;;  %v658_v27 = vld [vmem:[%s985_s1 + $0x18] sm:$0xff]  ;;  %vm470_vm2 = vcmask 523264  }
  0x16   : > { %308 = vperm.xlu0 %723, %v274_v0   ;;  %298 = vperm.xlu1 %724, %v272_v2   ;;  %s666_s12 = smul.u32 40, %s245_s11  ;;  %v269_v23 = vld [vmem:[%s986_s2 + $0x8] sm:$0xff]  ;;  %v655_v26 = vld [vmem:[%s985_s1] sm:$0xff]  ;;  %v270_v28 = vld [vmem:[%s986_s2 + $0x10] sm:$0xff]  ;;  %s659_s11 = sshll.u32 %s796_s21, 4 }
  0x17   : > { %725 = vset.pattern.permute.xlu2 %v806_v1  ;;  %v271_v29 = vld [vmem:[%s986_s2 + $0x18] sm:$0xff]  ;;  %v656_v30 = vld [vmem:[%s985_s1 + $0x8] sm:$0xff]  ;;  %v464_v31 = vld [vmem:[%s988_s4] sm:$0xff] }
  0x18   : > { %s251_s15 = scalar_lea.vmem %s984_s0, %s666_s12  ;;  %288 = vperm.xlu2 %725, %v270_v28   ;;  %v657_v32 = vld [vmem:[%s985_s1 + $0x10] sm:$0xff]  ;;  %s602_s12 = sshll.u32 %s240_s10, 4 }
  0x19   : > { %v259_v3 = vld [vmem:[%s251_s15 + $0x20] sm:$0x33]  ;;  %v630_v8 = vld [vmem:[%s251_s15 + $0x10] sm:$0xf]  ;;  %v654_v11 = vld [vmem:[%s251_s15 + $0x14] sm:$0xf0] }
  0x1a   : > { %v349_v5 = vunpack.c.l.b16 %v259_v3  ;;  %v350_v6 = vunpack.c.h.b16 %v259_v3  ;;  %v653_v12 = vld [vmem:[%s251_s15 + $0x14] sm:$0xf]  ;;  %v632_v13 = vld [vmem:[%s251_s15 + $0x18] sm:$0xf0]  ;;  %v631_v16 = vor.u32 %v654_v11, %v630_v8  ;;  %v622_v18 = vld [vmem:[%s251_s15] sm:$0xf] }
  0x1b   : > { %v635_v17 = vor.u32 %v653_v12, %v632_v13  ;;  %v652_v19 = vld [vmem:[%s251_s15 + $0x4] sm:$0xf0]  ;;  %v651_v20 = vld [vmem:[%s251_s15 + $0x4] sm:$0xf]  ;;  %v624_v21 = vld [vmem:[%s251_s15 + $0x8] sm:$0xf0]  ;;  %s516_s15 = scalar_lea.hbm %s989_s5, %s659_s11 }
  0x1c   : > { %v355_v9 = vpack.c.b16 %v349_v5, %v349_v5  ;;  %v356_v10 = vpack.c.b16 %v350_v6, %v350_v6  ;;  %v623_v24 = vor.u32 %v652_v19, %v622_v18  ;;  %v627_v25 = vor.u32 %v651_v20, %v624_v21  ;;  %s242_s16 = scalar_lea.vmem [#allocation2], %s602_s12  ;;  %s520_s24 = sshll.u32 %s516_s15, 4  ;;  %s521_s24 = int_to_ptr.hbm [resolvable:$true] %s520_s24 }
  0x1d   : > { %s518_s17 = sshll.u32 %s242_s16, 4  ;;  %s740_s21 = sshra.s32 %s521_s24, 4  ;;  %s519_s17 = int_to_ptr.vmem [resolvable:$true] %s518_s17  ;;  %s741_s21 = int_to_ptr.hbm [resolvable:$true] %s740_s21 }
  0x1e   : > { %313 = vperm.xlu0 %723, %v275_v4   ;;  %303 = vperm.xlu1 %724, %v273_v7   ;;  %v376_v14 = vsel %vm374_vm0, %v355_v9, 0  ;;  %v379_v15 = vsel %vm374_vm0, %v356_v10, 0  ;;  %s742_s27 = scalar_lea.hbm %s741_s21, 16  ;;  %p747_p1 = scmp.lt.s32.totalorder %s741_s21, %s989_s5 }
  0x1f   : > { %386 = vmatpush.bf16.msra.mxu0 %v376_v14  ;;  %415 = vmatpush.bf16.msra.mxu1 %v379_v15  ;;  %p743_p12 = scmp.ne.s32.totalorder %s741_s21, %s742_s27  ;;  %p748_p2 = scmp.lt.s32.totalorder %s746_s8, %s742_s27 }
  0x20   : > { %660 = vmatpush.bf16.msra.mxu2 %v376_v14  ;;  %663 = vmatpush.bf16.msra.mxu3 %v379_v15 }
  0x21   : > { %293 = vperm.xlu2 %725, %v271_v29   ;;  %p744_p13 = pnand %p743_p12, %p877_p4  ;;  %p749_p3 = por %p748_p2, %p747_p1 }
  0x23   : > { %387 = vmatpush.bf16.msra.mxu0 %v631_v16  ;;  %416 = vmatpush.bf16.msra.mxu1 %v635_v17  ;;  %p745_p0 = pneg %p744_p13 }
  0x24   : > { %661 = vmatpush.bf16.msra.mxu2 %v631_v16  ;;  %664 = vmatpush.bf16.msra.mxu3 %v635_v17 }
  0x25   : > { %p750_p5 = pnand %p749_p3, %p745_p0 }
  0x26   : > { %278 = vperm.xlu0 %723, %v268_v22   ;;  %283 = vperm.xlu1 %724, %v269_v23  }
  0x27   : > { %388 = vmatpush.bf16.msra.mxu0 %v623_v24  ;;  %417 = vmatpush.bf16.msra.mxu1 %v627_v25 }
  0x28   : > { %662 = vmatpush.bf16.msra.mxu2 %v623_v24  ;;  %665 = vmatpush.bf16.msra.mxu3 %v627_v25 }
  0x29   : > { %467 = vperm.xlu2 %725, %v464_v31  }
  0x2a   : > { %636 = vmatmul.msk.bf16.vlgmr.msra.gmra.mxu0 %vm361_vm1, %v655_v26  ;;  %640 = vmatmul.msk.bf16.vlgmr.msra.gmra.mxu1 %vm361_vm1, %v655_v26 }
  0x2b   : > { %639 = vmatmul.msk.bf16.vlgmr.msra.gmra.mxu2 %vm361_vm1, %v658_v27  ;;  %643 = vmatmul.msk.bf16.vlgmr.msra.gmra.mxu3 %vm361_vm1, %v658_v27 }
  0x3a   : > { %637 = vmatmul.msk.bf16.gmra.mxu0 %vm361_vm1, %v656_v30  ;;  %641 = vmatmul.msk.bf16.gmra.mxu1 %vm361_vm1, %v656_v30 }
  0x4a   : > { %638 = vmatmul.msk.bf16.gmra.mxu0 %vm361_vm1, %v657_v32  ;;  %642 = vmatmul.msk.bf16.gmra.mxu1 %vm361_vm1, %v657_v32 }
  0x72   : > { %v289_v58 = vpop.permute.xlu2 %288 }
  0x7b   : > { %v294_v62 = vpop.permute.xlu2 %293 }
  0x88   : > { %v309_v35 = vpop.permute.xlu0 %308  ;;  %v299_v55 = vpop.permute.xlu1 %298 }
  0x90   : > { %v314_v42 = vpop.permute.xlu0 %313  ;;  %v304_v59 = vpop.permute.xlu1 %303 }
  0x98   : > { %v284_v3 = vpop.permute.xlu1 %283  ;;  %v279_v14 = vpop.permute.xlu0 %278 }
  0xa7   : > { %v390_v33 = vpop.f32.mrf.mxu0  ;;  %v419_v34 = vpop.f32.mrf.mxu1 }
  0xa8   : > { %v391_v21 = vadd.f32 %v390_v33, %v279_v14  ;;  %v420_v22 = vadd.f32 %v419_v34, %v279_v14  ;;  %v455_v33 = vld [vmem:[%s987_s3] sm:$0xf]  ;;  %v468_v34 = vpop.permute.xlu2 %467 }
  0xaa   : > { %v439_v29 = vmax.f32 %v391_v21, 0.0  ;;  %v440_v30 = vmax.f32 %v420_v22, 0.0 }
  0xae   : > { %v405_v36 = vpop.f32.mrf.mxu2  ;;  %v434_v37 = vpop.f32.mrf.mxu3 }
  0xaf   : > { %v392_v38 = vpop.f32.mrf.mxu0  ;;  %v421_v39 = vpop.f32.mrf.mxu1  ;;  %v406_v40 = vadd.f32 %v405_v36, %v309_v35  ;;  %v435_v41 = vadd.f32 %v434_v37, %v309_v35 }
  0xb0   : > { %v393_v15 = vadd.f32 %v392_v38, %v284_v3  ;;  %v422_v16 = vadd.f32 %v421_v39, %v284_v3 }
  0xb1   : > { %v451_v47 = vmax.f32 %v406_v40, 0.0  ;;  %v452_v48 = vmax.f32 %v435_v41, 0.0 }
  0xb2   : > { %v441_v25 = vmax.f32 %v393_v15, 0.0  ;;  %v442_v26 = vmax.f32 %v422_v16, 0.0 }
  0xb4   : > { %v456_v31 = vpack.c.bf16 %v441_v25, %v439_v29  ;;  %v457_v32 = vpack.c.bf16 %v442_v26, %v440_v30 }
  0xb6   : > { %v407_v43 = vpop.f32.mrf.mxu2  ;;  %v436_v44 = vpop.f32.mrf.mxu3 }
  0xb7   : > { %v395_v45 = vpop.f32.mrf.mxu0  ;;  %v424_v46 = vpop.f32.mrf.mxu1  ;;  %v408_v49 = vadd.f32 %v407_v43, %v314_v42  ;;  %v437_v50 = vadd.f32 %v436_v44, %v314_v42 }
  0xb8   : > { %v396_v8 = vadd.f32 %v395_v45, %v289_v58  ;;  %v425_v9 = vadd.f32 %v424_v46, %v289_v58 }
  0xb9   : > { %v453_v51 = vmax.f32 %v408_v49, 0.0  ;;  %v454_v52 = vmax.f32 %v437_v50, 0.0 }
  0xba   : > { %v443_v23 = vmax.f32 %v396_v8, 0.0  ;;  %v444_v24 = vmax.f32 %v425_v9, 0.0 }
  0xbb   : > { %v462_v53 = vpack.c.bf16 %v453_v51, %v451_v47  ;;  %v463_v54 = vpack.c.bf16 %v454_v52, %v452_v48 }
  0xbd   : > { %478 = vmatpush.bf16.msrb.mxu2 %v462_v53  ;;  %491 = vmatpush.bf16.msrb.mxu3 %v463_v54 }
  0xbf   : > { %v397_v56 = vpop.f32.mrf.mxu0  ;;  %v426_v57 = vpop.f32.mrf.mxu1 }
  0xc0   : > { %v398_v4 = vadd.f32 %v397_v56, %v294_v62  ;;  %v427_v5 = vadd.f32 %v426_v57, %v294_v62 }
  0xc2   : > { %v445_v17 = vmax.f32 %v398_v4, 0.0  ;;  %v446_v18 = vmax.f32 %v427_v5, 0.0 }
  0xc4   : > { %v458_v27 = vpack.c.bf16 %v445_v17, %v443_v23  ;;  %v459_v28 = vpack.c.bf16 %v446_v18, %v444_v24 }
  0xc7   : > { %v400_v60 = vpop.f32.mrf.mxu0  ;;  %v429_v61 = vpop.f32.mrf.mxu1 }
  0xc8   : > { %v401_v63 = vadd.f32 %v400_v60, %v299_v55  ;;  %v430_v0 = vadd.f32 %v429_v61, %v299_v55 }
  0xca   : > { %v447_v10 = vmax.f32 %v401_v63, 0.0  ;;  %v448_v11 = vmax.f32 %v430_v0, 0.0 }
  0xcf   : > { %v402_v1 = vpop.f32.mrf.mxu0  ;;  %v431_v2 = vpop.f32.mrf.mxu1 }
  0xd0   : > { %v403_v6 = vadd.f32 %v402_v1, %v304_v59  ;;  %v432_v7 = vadd.f32 %v431_v2, %v304_v59 }
  0xd2   : > { %v449_v12 = vmax.f32 %v403_v6, 0.0  ;;  %v450_v13 = vmax.f32 %v432_v7, 0.0 }
  0xd4   : > { %v460_v19 = vpack.c.bf16 %v449_v12, %v447_v10  ;;  %v461_v20 = vpack.c.bf16 %v450_v13, %v448_v11 }
  0xd6   : > { %479 = vmatpush.bf16.msrb.mxu2 %v460_v19  ;;  %492 = vmatpush.bf16.msrb.mxu3 %v461_v20 }
  0xda   : > { %480 = vmatpush.bf16.msrb.mxu2 %v458_v27  ;;  %493 = vmatpush.bf16.msrb.mxu3 %v459_v28 }
  0xde   : > { %481 = vmatpush.bf16.msrb.mxu2 %v456_v31  ;;  %494 = vmatpush.bf16.msrb.mxu3 %v457_v32 }
  0xe1   : > { %644 = vmatmul.msk.bf16.vlgmr.msrb.gmra.mxu2 %vm470_vm2, %v455_v33  ;;  %645 = vmatmul.msk.bf16.vlgmr.msrb.gmra.mxu3 %vm470_vm2, %v455_v33 }
 0x164   : > { %v483_v35 = vpop.f32.mrf.mxu2  ;;  %v496_v36 = vpop.f32.mrf.mxu3 }
 0x165   : > { %v484_v37 = vadd.f32 %v483_v35, %v468_v34  ;;  %v497_v38 = vadd.f32 %v496_v36, %v468_v34 }
 0x167   : > { %500 = vst [vmem:[%s242_s16] sm:$0xff] %v484_v37 }
 0x168   : > { %501 = vst [vmem:[%s242_s16 + $0x8] sm:$0xff] %v497_v38 }
 0x169   : > { %753 = shalt.err (!%p750_p5)
}
 0x16a   : > { %667 = dma.vmem_to_hbm [thread:$0]  (%p877_p4), %s519_s17, 256, %s521_s24, %s503_s25  }
 0x16c   : > { %v485_v39 = vpop.f32.mrf.mxu2  ;;  %v498_v40 = vpop.f32.mrf.mxu3 }
 0x16d PF: > { %p673_p6 = scmp.ge.s32.totalorder %s804_s23, 2  ;;  %s532_s10 = sand.u32 1, %s784_s18  }
 0x16e   : > { %s533_s12 = scalar_lea.sflag [#allocation3], %s532_s10 }
 0x16f   : > { %p670_p7 = pnand %p673_p6, %p884_p8 }
 0x171   : > { %p671_p9 = pneg %p670_p7 }
 0x173   : > { %779 = dma.done.wait (%p671_p9), %s533_s12, 256  }
 0x174   : > { %781 = vsyncadd (%p671_p9), %s533_s12, 4294967040  ;;  %s18_s23 = sadd.s32 1, %s804_s23   ;;  %s992_s18 = smov %s788_s19 }
 0x175   : > { %p15_p10 = scmp.ge.s32.totalorder %s18_s23, 4   ;;  %s993_s19 = smov %s792_s20 }
 0x176   : > { %s994_s20 = smov %s890_s6  ;;  %s995_s21 = smov %s800_s22 }
 0x177   : > { %s996_s22 = smov %s998_s26  ;;  %17 = sbr.rel (!%p15_p10) target bundleno = 4 (0x4), region = 75 }
 0x17c   :  { %539 = vsyncpa [#allocation3], 1 }
 0x17d   :  { %541 = vsyncpa [#allocation3 + $0x1], 1 }

</bundles_post_ra>
